<compile_context>
chip_gen: v5e
topology: v5e:2x2
jax: 0.10.0
libtpu: 0.0.40
codegen_flags: <defaults>
</compile_context>

<pallas_src>
import functools

import jax
import jax.numpy as jnp
from jax.experimental import pallas as pl
from jax.experimental.pallas import tpu as pltpu

VOCAB = 256
D_MODEL = 128
L_ENC = 8


# ------------------------------- Pallas kernel -------------------------------

def _generate_kernel(prev_tok_ref, scal_ref, first_logits_ref, enc_ref,
                     emb_ref, wq_ref, wk_ref, wv_ref, wlm_ref,
                     tokens_ref, count_ref, logits_ref,
                     k_scr, v_scr, mask_scr, state_scr):
    """Fused greedy generation loop.

    grid = (max_length,).  Step 0 consumes the precomputed dec_outputs logits;
    steps 1..T-1 run the synthetic decoder step.  Persistent scratch:
      k_scr/v_scr : cross-attention K/V (step-invariant)
      mask_scr    : (1,V) repetition-penalty multiplicative mask
      state_scr   : SMEM [stopped_flag, emitted_count, last_token]
    """
    j = pl.program_id(0)
    inv_temp = scal_ref[0]
    inv_pen = scal_ref[1]
    vocab = mask_scr.shape[-1]
    idx = jax.lax.broadcasted_iota(jnp.int32, (1, vocab), 1)

    def first_argmax(x):  # first index of the max (scalar int32)
        mx = jnp.max(x, axis=-1, keepdims=True)
        cand = jnp.where(x == mx, idx, jnp.int32(vocab))
        return jnp.min(cand)

    def emit(penalized, tok):
        cnt = state_scr[1]
        logits_ref[pl.ds(cnt, 1), :] = penalized
        tokens_ref[cnt] = tok
        state_scr[1] = cnt + 1
        state_scr[2] = tok
        # set-semantics mask update (token penalized at most once per step)
        mask_scr[...] = jnp.where(idx == tok, inv_pen, mask_scr[...])

    # ----------------- step 0: one-time setup + first token -----------------
    @pl.when(j == 0)
    def _init():
        # Cross-attention K / V are step-invariant: compute once into VMEM.
        enc = enc_ref[...]                                          # (L, D) bf16
        k_scr[...] = jnp.dot(enc, wk_ref[...],
                             preferred_element_type=jnp.float32)    # (L, D) f32
        v_scr[...] = jnp.dot(enc, wv_ref[...],
                             preferred_element_type=jnp.float32)    # (L, D) f32

        # Repetition-penalty mask seeded from previously generated tokens.
        mask = jnp.ones((1, vocab), jnp.float32)
        for t in range(prev_tok_ref.shape[0]):                      # static, small
            mask = jnp.where(idx == prev_tok_ref[t], inv_pen, mask)
        mask_scr[...] = mask

        logits_ref[...] = jnp.zeros_like(logits_ref)
        for t in range(tokens_ref.shape[0]):                        # static, small
            tokens_ref[t] = 0
        state_scr[0] = 0      # stopped flag
        state_scr[1] = 0      # emitted-token count
        state_scr[2] = 0      # last emitted token id

        # First token comes from the precomputed dec_outputs logits (no decoder,
        # no EOS check — matches the reference).
        scaled = first_logits_ref[...] * inv_temp                   # (1, V)
        penalized = scaled * mask_scr[...]
        emit(penalized, first_argmax(penalized))

    # ----------------- steps 1..T-1: fused decoder + selection --------------
    @pl.when(jnp.logical_and(j > 0, state_scr[0] == 0))
    def _step():
        last_tok = state_scr[2]
        emb = emb_ref[pl.ds(last_tok, 1), :]                        # (1, D) f32
        emb_b = emb.astype(jnp.bfloat16)
        # wq has 1/sqrt(D) folded in at init.
        q = jnp.dot(emb_b, wq_ref[...],
                    preferred_element_type=jnp.float32)             # (1, D)
        s = jax.lax.dot_general(q, k_scr[...], (((1,), (1,)), ((), ())),
                                preferred_element_type=jnp.float32)  # (1, L)
        m = jnp.max(s, axis=-1, keepdims=True)
        p = jnp.exp(s - m)
        p = p * pl.reciprocal(jnp.sum(p, axis=-1, keepdims=True), approx=True)
        ctx = jnp.dot(p, v_scr[...],
                      preferred_element_type=jnp.float32)           # (1, D)
        h = emb + ctx
        logits = jnp.dot(h.astype(jnp.bfloat16), wlm_ref[...],
                         preferred_element_type=jnp.float32)        # (1, V)
        scaled = logits * inv_temp

        # EOS check on the PRE-penalty logits (matches the reference ordering).
        is_eos = first_argmax(scaled) == 1

        @pl.when(is_eos)
        def _():
            state_scr[0] = 1

        @pl.when(jnp.logical_not(is_eos))
        def _():
            penalized = scaled * mask_scr[...]
            emit(penalized, first_argmax(penalized))

    # ----------------- finalize ----------------------------------------------
    @pl.when(j == pl.num_programs(0) - 1)
    def _fin():
        count_ref[0] = state_scr[1]


@functools.partial(jax.jit, static_argnums=0)
def _generate(max_length, prev_tokens, scalars, first_logits, enc, emb_tab,
              wq, wk, wv, wlm):
    vocab = wlm.shape[-1]
    l_enc, d_model = enc.shape
    vmem = pl.BlockSpec(memory_space=pltpu.MemorySpace.VMEM)
    smem = pl.BlockSpec(memory_space=pltpu.MemorySpace.SMEM)
    return pl.pallas_call(
        _generate_kernel,
        grid=(max_length,),
        out_shape=(
            jax.ShapeDtypeStruct((max_length,), jnp.int32),          # tokens
            jax.ShapeDtypeStruct((1,), jnp.int32),                   # count
            jax.ShapeDtypeStruct((max_length, vocab), jnp.float32),  # penalized logits
        ),
        in_specs=[smem, smem, vmem, vmem, vmem, vmem, vmem, vmem, vmem],
        out_specs=(smem, smem, vmem),
        scratch_shapes=[
            pltpu.VMEM((l_enc, d_model), jnp.float32),   # K
            pltpu.VMEM((l_enc, d_model), jnp.float32),   # V
            pltpu.VMEM((1, vocab), jnp.float32),         # penalty mask
            pltpu.SMEM((3,), jnp.int32),                 # [stopped, count, last_tok]
        ],
        compiler_params=pltpu.CompilerParams(
            dimension_semantics=("arbitrary",)),
    )(prev_tokens, scalars, first_logits, enc, emb_tab, wq, wk, wv, wlm)


# -------------------------------- Python glue --------------------------------

class DummyTokenizer:
    def decode(self, tokens):
        return " ".join(str(int(t)) for t in tokens)


class GenerativeT5DecoderPallas:
    """JAX/Pallas port of GenerativeT5_decoder.forward (greedy temperature==0 path)."""

    def __init__(self, encoder_hidden_state, dec_outputs, decoder_params, tokenizer):
        d = decoder_params["wq"].shape[0]
        scale = 1.0 / (float(d) ** 0.5)
        # bf16 weights (MXU-native), f32 embedding table (clean row gather),
        # 1/sqrt(d) folded into wq.
        self.enc = encoder_hidden_state.astype(jnp.bfloat16)
        self.dec_outputs = dec_outputs
        self.embedding = decoder_params["embedding"].astype(jnp.float32)
        self.wq = (decoder_params["wq"] * scale).astype(jnp.bfloat16)
        self.wk = decoder_params["wk"].astype(jnp.bfloat16)
        self.wv = decoder_params["wv"].astype(jnp.bfloat16)
        self.wlm = decoder_params["wlm"].astype(jnp.bfloat16)
        self.tokenizer = tokenizer
        self.vocab_size = decoder_params["wlm"].shape[-1]

    def forward(self, max_length, prev_decOut_tensor, temperature=1.0,
                repetition_penalty=1.0, top_k=50, top_p=0,
                max_context_length=512):
        # TODO(synk): top_k_top_p_filtering + torch.multinomial sampling
        # (temperature > 0) has no deterministic Pallas equivalent here; only the
        # greedy (temperature == 0) branch is implemented.
        temp = temperature if temperature > 0 else 1.0
        scalars = jnp.array([1.0 / temp, 1.0 / repetition_penalty], jnp.float32)
        first_logits = self.dec_outputs[0][-1, :].reshape(1, -1).astype(jnp.float32)
        prev_tokens = prev_decOut_tensor.reshape(-1).astype(jnp.int32)

        tokens, count, logits = _generate(
            max_length, prev_tokens, scalars, first_logits, self.enc,
            self.embedding, self.wq, self.wk, self.wv, self.wlm)
        jax.block_until_ready((tokens, count, logits))

        n = int(count[0])
        new_tokens = [int(t) for t in tokens[:n]]
        new_logits = [logits[i] for i in range(n)]
        return self.tokenizer.decode(new_tokens), new_logits


# ------------------------------------ main ------------------------------------

if __name__ == "__main__":
    key = jax.random.PRNGKey(0)
    ks = jax.random.split(key, 8)

    prev_len = 3
    encoder_hidden_state = jax.random.normal(ks[0], (L_ENC, D_MODEL), jnp.float32)
    dec_outputs = jax.random.normal(ks[1], (1, prev_len, VOCAB), jnp.float32)
    prev_decOut_tensor = jax.random.randint(ks[2], (1, prev_len), 0, VOCAB,
                                            dtype=jnp.int32)

    decoder_params = dict(
        embedding=0.02 * jax.random.normal(ks[3], (VOCAB, D_MODEL), jnp.float32),
        wq=0.02 * jax.random.normal(ks[4], (D_MODEL, D_MODEL), jnp.float32),
        wk=0.02 * jax.random.normal(ks[5], (D_MODEL, D_MODEL), jnp.float32),
        wv=0.02 * jax.random.normal(ks[6], (D_MODEL, D_MODEL), jnp.float32),
        wlm=0.02 * jax.random.normal(ks[7], (D_MODEL, VOCAB), jnp.float32),
    )

    model = GenerativeT5DecoderPallas(encoder_hidden_state, dec_outputs,
                                      decoder_params, DummyTokenizer())

    text, new_logits = model.forward(max_length=4,
                                     prev_decOut_tensor=prev_decOut_tensor,
                                     temperature=0.0,
                                     repetition_penalty=1.2)
    for l in new_logits:
        jax.block_until_ready(l)
    print("KERNEL_OK")
</pallas_src>

<mosaic_0001>
module attributes {stable_mosaic.version = 11 : i64} {
  func.func @_generate_kernel(%arg0: i32, %arg1: memref<3xi32, #tpu.memory_space<smem>>, %arg2: memref<2xf32, #tpu.memory_space<smem>>, %arg3: memref<1x256xf32, #tpu.memory_space<vmem>>, %arg4: memref<8x128xbf16, #tpu.memory_space<vmem>>, %arg5: memref<256x128xf32, #tpu.memory_space<vmem>>, %arg6: memref<128x128xbf16, #tpu.memory_space<vmem>>, %arg7: memref<128x128xbf16, #tpu.memory_space<vmem>>, %arg8: memref<128x128xbf16, #tpu.memory_space<vmem>>, %arg9: memref<128x256xbf16, #tpu.memory_space<vmem>>, %arg10: memref<4xi32, #tpu.memory_space<smem>>, %arg11: memref<1xi32, #tpu.memory_space<smem>>, %arg12: memref<4x256xf32, #tpu.memory_space<vmem>>, %arg13: memref<8x128xf32, #tpu.memory_space<vmem>>, %arg14: memref<8x128xf32, #tpu.memory_space<vmem>>, %arg15: memref<1x256xf32, #tpu.memory_space<vmem>>, %arg16: memref<3xi32, #tpu.memory_space<smem>>) attributes {dimension_semantics = [#tpu.dimension_semantics<arbitrary>], iteration_bounds = array<i64: 4>, scalar_prefetch = 0 : i64, scratch_operands = 4 : i64, tpu.core_type = #tpu.core_type<tc>, window_params = [{transform_indices = @transform_0, window_bounds = array<i64: 3>}, {transform_indices = @transform_1, window_bounds = array<i64: 2>}, {pipeline_mode = #tpu.pipeline_mode<synchronous>, transform_indices = @transform_2, window_bounds = array<i64: 1, 256>}, {pipeline_mode = #tpu.pipeline_mode<synchronous>, transform_indices = @transform_3, window_bounds = array<i64: 8, 128>}, {pipeline_mode = #tpu.pipeline_mode<synchronous>, transform_indices = @transform_4, window_bounds = array<i64: 256, 128>}, {pipeline_mode = #tpu.pipeline_mode<synchronous>, transform_indices = @transform_5, window_bounds = array<i64: 128, 128>}, {pipeline_mode = #tpu.pipeline_mode<synchronous>, transform_indices = @transform_6, window_bounds = array<i64: 128, 128>}, {pipeline_mode = #tpu.pipeline_mode<synchronous>, transform_indices = @transform_7, window_bounds = array<i64: 128, 128>}, {pipeline_mode = #tpu.pipeline_mode<synchronous>, transform_indices = @transform_8, window_bounds = array<i64: 128, 256>}, {transform_indices = @transform_9, window_bounds = array<i64: 4>}, {transform_indices = @transform_10, window_bounds = array<i64: 1>}, {pipeline_mode = #tpu.pipeline_mode<synchronous>, transform_indices = @transform_11, window_bounds = array<i64: 4, 256>}]} {
    %c0 = arith.constant 0 : index
    %0 = memref.load %arg2[%c0] : memref<2xf32, #tpu.memory_space<smem>>
    %c1 = arith.constant 1 : index
    %1 = memref.load %arg2[%c1] : memref<2xf32, #tpu.memory_space<smem>>
    %2 = tpu.iota {dimensions = array<i32: 1>} : vector<1x256xi32>
    %c0_i32 = arith.constant 0 : i32
    %3 = arith.cmpi eq, %arg0, %c0_i32 : i32
    %4 = arith.extui %3 : i1 to i32
    %c0_i32_0 = arith.constant 0 : i32
    %5 = arith.cmpi ne, %4, %c0_i32_0 : i32
    scf.if %5 {
      %c0_6 = arith.constant 0 : index
      %c0_7 = arith.constant 0 : index
      %15 = vector.load %arg4[%c0_6, %c0_7] : memref<8x128xbf16, #tpu.memory_space<vmem>>, vector<8x128xbf16>
      %c0_8 = arith.constant 0 : index
      %c0_9 = arith.constant 0 : index
      %16 = vector.load %arg7[%c0_8, %c0_9] : memref<128x128xbf16, #tpu.memory_space<vmem>>, vector<128x128xbf16>
      %cst = arith.constant dense<0.000000e+00> : vector<8x128xf32>
      %17 = tpu.matmul %15, %16, %cst {dimension_numbers = #tpu.dot_dimension_numbers<[1], [0], [0], [1], [0, 0, 1, 1], [], []>} : vector<8x128xbf16>, vector<128x128xbf16>, vector<8x128xf32> -> vector<8x128xf32>
      %c0_10 = arith.constant 0 : index
      %c0_11 = arith.constant 0 : index
      %18 = vector.load %arg13[%c0_10, %c0_11] : memref<8x128xf32, #tpu.memory_space<vmem>>, vector<8x128xf32>
      tpu.vector_store %arg13[%c0_10, %c0_11], %17 {strides = array<i32>} : memref<8x128xf32, #tpu.memory_space<vmem>>, vector<8x128xf32>,
      %c0_12 = arith.constant 0 : index
      %c0_13 = arith.constant 0 : index
      %19 = vector.load %arg8[%c0_12, %c0_13] : memref<128x128xbf16, #tpu.memory_space<vmem>>, vector<128x128xbf16>
      %cst_14 = arith.constant dense<0.000000e+00> : vector<8x128xf32>
      %20 = tpu.matmul %15, %19, %cst_14 {dimension_numbers = #tpu.dot_dimension_numbers<[1], [0], [0], [1], [0, 0, 1, 1], [], []>} : vector<8x128xbf16>, vector<128x128xbf16>, vector<8x128xf32> -> vector<8x128xf32>
      %c0_15 = arith.constant 0 : index
      %c0_16 = arith.constant 0 : index
      %21 = vector.load %arg14[%c0_15, %c0_16] : memref<8x128xf32, #tpu.memory_space<vmem>>, vector<8x128xf32>
      tpu.vector_store %arg14[%c0_15, %c0_16], %20 {strides = array<i32>} : memref<8x128xf32, #tpu.memory_space<vmem>>, vector<8x128xf32>,
      %cst_17 = arith.constant 1.000000e+00 : f32
      %22 = vector.broadcast %cst_17 : f32 to vector<1x256xf32>
      %c0_18 = arith.constant 0 : index
      %23 = memref.load %arg1[%c0_18] : memref<3xi32, #tpu.memory_space<smem>>
      %24 = vector.broadcast %23 : i32 to vector<1x256xi32>
      %25 = arith.cmpi eq, %2, %24 : vector<1x256xi32>
      %26 = vector.broadcast %1 : f32 to vector<1x256xf32>
      %27 = arith.select %25, %26, %22 : vector<1x256xi1>, vector<1x256xf32>
      %c1_19 = arith.constant 1 : index
      %28 = memref.load %arg1[%c1_19] : memref<3xi32, #tpu.memory_space<smem>>
      %29 = vector.broadcast %28 : i32 to vector<1x256xi32>
      %30 = arith.cmpi eq, %2, %29 : vector<1x256xi32>
      %31 = vector.broadcast %1 : f32 to vector<1x256xf32>
      %32 = arith.select %30, %31, %27 : vector<1x256xi1>, vector<1x256xf32>
      %c2 = arith.constant 2 : index
      %33 = memref.load %arg1[%c2] : memref<3xi32, #tpu.memory_space<smem>>
      %34 = vector.broadcast %33 : i32 to vector<1x256xi32>
      %35 = arith.cmpi eq, %2, %34 : vector<1x256xi32>
      %36 = vector.broadcast %1 : f32 to vector<1x256xf32>
      %37 = arith.select %35, %36, %32 : vector<1x256xi1>, vector<1x256xf32>
      %c0_20 = arith.constant 0 : index
      %c0_21 = arith.constant 0 : index
      %38 = vector.load %arg15[%c0_20, %c0_21] : memref<1x256xf32, #tpu.memory_space<vmem>>, vector<1x256xf32>
      tpu.vector_store %arg15[%c0_20, %c0_21], %37 {strides = array<i32>} : memref<1x256xf32, #tpu.memory_space<vmem>>, vector<1x256xf32>,
      %cst_22 = arith.constant 0.000000e+00 : f32
      %39 = vector.broadcast %cst_22 : f32 to vector<4x256xf32>
      %c0_23 = arith.constant 0 : index
      %c0_24 = arith.constant 0 : index
      %40 = vector.load %arg12[%c0_23, %c0_24] : memref<4x256xf32, #tpu.memory_space<vmem>>, vector<4x256xf32>
      tpu.vector_store %arg12[%c0_23, %c0_24], %39 {strides = array<i32>} : memref<4x256xf32, #tpu.memory_space<vmem>>, vector<4x256xf32>,
      %c0_i32_25 = arith.constant 0 : i32
      %c0_26 = arith.constant 0 : index
      %41 = memref.load %arg10[%c0_26] : memref<4xi32, #tpu.memory_space<smem>>
      memref.store %c0_i32_25, %arg10[%c0_26] : memref<4xi32, #tpu.memory_space<smem>>
      %c0_i32_27 = arith.constant 0 : i32
      %c1_28 = arith.constant 1 : index
      %42 = memref.load %arg10[%c1_28] : memref<4xi32, #tpu.memory_space<smem>>
      memref.store %c0_i32_27, %arg10[%c1_28] : memref<4xi32, #tpu.memory_space<smem>>
      %c0_i32_29 = arith.constant 0 : i32
      %c2_30 = arith.constant 2 : index
      %43 = memref.load %arg10[%c2_30] : memref<4xi32, #tpu.memory_space<smem>>
      memref.store %c0_i32_29, %arg10[%c2_30] : memref<4xi32, #tpu.memory_space<smem>>
      %c0_i32_31 = arith.constant 0 : i32
      %c3 = arith.constant 3 : index
      %44 = memref.load %arg10[%c3] : memref<4xi32, #tpu.memory_space<smem>>
      memref.store %c0_i32_31, %arg10[%c3] : memref<4xi32, #tpu.memory_space<smem>>
      %c0_i32_32 = arith.constant 0 : i32
      %c0_33 = arith.constant 0 : index
      %45 = memref.load %arg16[%c0_33] : memref<3xi32, #tpu.memory_space<smem>>
      memref.store %c0_i32_32, %arg16[%c0_33] : memref<3xi32, #tpu.memory_space<smem>>
      %c0_i32_34 = arith.constant 0 : i32
      %c1_35 = arith.constant 1 : index
      %46 = memref.load %arg16[%c1_35] : memref<3xi32, #tpu.memory_space<smem>>
      memref.store %c0_i32_34, %arg16[%c1_35] : memref<3xi32, #tpu.memory_space<smem>>
      %c0_i32_36 = arith.constant 0 : i32
      %c2_37 = arith.constant 2 : index
      %47 = memref.load %arg16[%c2_37] : memref<3xi32, #tpu.memory_space<smem>>
      memref.store %c0_i32_36, %arg16[%c2_37] : memref<3xi32, #tpu.memory_space<smem>>
      %c0_38 = arith.constant 0 : index
      %c0_39 = arith.constant 0 : index
      %48 = vector.load %arg3[%c0_38, %c0_39] : memref<1x256xf32, #tpu.memory_space<vmem>>, vector<1x256xf32>
      %49 = vector.broadcast %0 : f32 to vector<1x256xf32>
      %50 = arith.mulf %48, %49 : vector<1x256xf32>
      %c0_40 = arith.constant 0 : index
      %c0_41 = arith.constant 0 : index
      %51 = vector.load %arg15[%c0_40, %c0_41] : memref<1x256xf32, #tpu.memory_space<vmem>>, vector<1x256xf32>
      %52 = arith.mulf %50, %51 : vector<1x256xf32>
      %cst_42 = arith.constant dense<0xFF800000> : vector<1xf32>
      %53 = vector.multi_reduction <maximumf>, %52, %cst_42 [1] : vector<1x256xf32> to vector<1xf32>
      %54 = vector.shape_cast %53 : vector<1xf32> to vector<1x1xf32>
      %55 = vector.broadcast %54 : vector<1x1xf32> to vector<1x256xf32>
      %56 = arith.cmpf oeq, %52, %55 : vector<1x256xf32>
      %c256_i32 = arith.constant 256 : i32
      %57 = vector.broadcast %c256_i32 : i32 to vector<1x256xi32>
      %58 = arith.select %56, %2, %57 : vector<1x256xi1>, vector<1x256xi32>
      %59 = vector.shape_cast %58 : vector<1x256xi32> to vector<1x1x256xi32>
      %cst_43 = arith.constant dense<2147483647> : vector<1xi32>
      %60 = vector.multi_reduction <minsi>, %59, %cst_43 [1, 2] : vector<1x1x256xi32> to vector<1xi32>
      %61 = vector.shape_cast %60 : vector<1xi32> to vector<1x1x1xi32>
      %62 = vector.extract %61[0, 0, 0] : i32 from vector<1x1x1xi32>
      %c1_44 = arith.constant 1 : index
      %63 = memref.load %arg16[%c1_44] : memref<3xi32, #tpu.memory_space<smem>>
      %64 = arith.index_cast %63 : i32 to index
      %c0_45 = arith.constant 0 : index
      %65 = vector.load %arg12[%64, %c0_45] : memref<4x256xf32, #tpu.memory_space<vmem>>, vector<1x256xf32>
      tpu.vector_store %arg12[%64, %c0_45], %52 {strides = array<i32>} : memref<4x256xf32, #tpu.memory_space<vmem>>, vector<1x256xf32>,
      %66 = arith.index_cast %63 : i32 to index
      %67 = memref.load %arg10[%66] : memref<4xi32, #tpu.memory_space<smem>>
      memref.store %62, %arg10[%66] : memref<4xi32, #tpu.memory_space<smem>>
      %c1_i32 = arith.constant 1 : i32
      %68 = arith.addi %63, %c1_i32 : i32
      %c1_46 = arith.constant 1 : index
      %69 = memref.load %arg16[%c1_46] : memref<3xi32, #tpu.memory_space<smem>>
      memref.store %68, %arg16[%c1_46] : memref<3xi32, #tpu.memory_space<smem>>
      %c2_47 = arith.constant 2 : index
      %70 = memref.load %arg16[%c2_47] : memref<3xi32, #tpu.memory_space<smem>>
      memref.store %62, %arg16[%c2_47] : memref<3xi32, #tpu.memory_space<smem>>
      %71 = vector.broadcast %62 : i32 to vector<1x256xi32>
      %72 = arith.cmpi eq, %2, %71 : vector<1x256xi32>
      %c0_48 = arith.constant 0 : index
      %c0_49 = arith.constant 0 : index
      %73 = vector.load %arg15[%c0_48, %c0_49] : memref<1x256xf32, #tpu.memory_space<vmem>>, vector<1x256xf32>
      %74 = vector.broadcast %1 : f32 to vector<1x256xf32>
      %75 = arith.select %72, %74, %73 : vector<1x256xi1>, vector<1x256xf32>
      %c0_50 = arith.constant 0 : index
      %c0_51 = arith.constant 0 : index
      %76 = vector.load %arg15[%c0_50, %c0_51] : memref<1x256xf32, #tpu.memory_space<vmem>>, vector<1x256xf32>
      tpu.vector_store %arg15[%c0_50, %c0_51], %75 {strides = array<i32>} : memref<1x256xf32, #tpu.memory_space<vmem>>, vector<1x256xf32>,
    } else {
    }
    %c0_i32_1 = arith.constant 0 : i32
    %6 = arith.cmpi sgt, %arg0, %c0_i32_1 : i32
    %c0_2 = arith.constant 0 : index
    %7 = memref.load %arg16[%c0_2] : memref<3xi32, #tpu.memory_space<smem>>
    %c0_i32_3 = arith.constant 0 : i32
    %8 = arith.cmpi eq, %7, %c0_i32_3 : i32
    %9 = arith.andi %6, %8 : i1
    %10 = arith.extui %9 : i1 to i32
    %c0_i32_4 = arith.constant 0 : i32
    %11 = arith.cmpi ne, %10, %c0_i32_4 : i32
    scf.if %11 {
      %c2 = arith.constant 2 : index
      %15 = memref.load %arg16[%c2] : memref<3xi32, #tpu.memory_space<smem>>
      %16 = arith.index_cast %15 : i32 to index
      %c0_6 = arith.constant 0 : index
      %17 = vector.load %arg5[%16, %c0_6] : memref<256x128xf32, #tpu.memory_space<vmem>>, vector<1x128xf32>
      %18 = arith.truncf %17 : vector<1x128xf32> to vector<1x128xbf16>
      %c0_7 = arith.constant 0 : index
      %c0_8 = arith.constant 0 : index
      %19 = vector.load %arg6[%c0_7, %c0_8] : memref<128x128xbf16, #tpu.memory_space<vmem>>, vector<128x128xbf16>
      %cst = arith.constant dense<0.000000e+00> : vector<1x128xf32>
      %20 = tpu.matmul %18, %19, %cst {dimension_numbers = #tpu.dot_dimension_numbers<[1], [0], [0], [1], [0, 0, 1, 1], [], []>} : vector<1x128xbf16>, vector<128x128xbf16>, vector<1x128xf32> -> vector<1x128xf32>
      %c0_9 = arith.constant 0 : index
      %c0_10 = arith.constant 0 : index
      %21 = vector.load %arg13[%c0_9, %c0_10] : memref<8x128xf32, #tpu.memory_space<vmem>>, vector<8x128xf32>
      %cst_11 = arith.constant dense<0.000000e+00> : vector<1x8xf32>
      %22 = tpu.matmul %20, %21, %cst_11 {dimension_numbers = #tpu.dot_dimension_numbers<[1], [1], [0], [0], [0, 0, 1, 0], [], []>} : vector<1x128xf32>, vector<8x128xf32>, vector<1x8xf32> -> vector<1x8xf32>
      %cst_12 = arith.constant dense<0xFF800000> : vector<1xf32>
      %23 = vector.multi_reduction <maximumf>, %22, %cst_12 [1] : vector<1x8xf32> to vector<1xf32>
      %24 = vector.shape_cast %23 : vector<1xf32> to vector<1x1xf32>
      %25 = vector.broadcast %24 : vector<1x1xf32> to vector<1x8xf32>
      %26 = arith.subf %22, %25 : vector<1x8xf32>
      %27 = math.exp %26 : vector<1x8xf32>
      %cst_13 = arith.constant dense<0.000000e+00> : vector<1xf32>
      %28 = vector.multi_reduction <add>, %27, %cst_13 [1] : vector<1x8xf32> to vector<1xf32>
      %29 = vector.shape_cast %28 : vector<1xf32> to vector<1x1xf32>
      %30 = tpu.reciprocal %29 {approx = true} : vector<1x1xf32> -> vector<1x1xf32>
      %31 = vector.broadcast %30 : vector<1x1xf32> to vector<1x8xf32>
      %32 = arith.mulf %27, %31 : vector<1x8xf32>
      %c0_14 = arith.constant 0 : index
      %c0_15 = arith.constant 0 : index
      %33 = vector.load %arg14[%c0_14, %c0_15] : memref<8x128xf32, #tpu.memory_space<vmem>>, vector<8x128xf32>
      %cst_16 = arith.constant dense<0.000000e+00> : vector<1x128xf32>
      %34 = tpu.matmul %32, %33, %cst_16 {dimension_numbers = #tpu.dot_dimension_numbers<[1], [0], [0], [1], [0, 0, 1, 1], [], []>} : vector<1x8xf32>, vector<8x128xf32>, vector<1x128xf32> -> vector<1x128xf32>
      %35 = arith.addf %17, %34 : vector<1x128xf32>
      %36 = arith.truncf %35 : vector<1x128xf32> to vector<1x128xbf16>
      %c0_17 = arith.constant 0 : index
      %c0_18 = arith.constant 0 : index
      %37 = vector.load %arg9[%c0_17, %c0_18] : memref<128x256xbf16, #tpu.memory_space<vmem>>, vector<128x256xbf16>
      %cst_19 = arith.constant dense<0.000000e+00> : vector<1x256xf32>
      %38 = tpu.matmul %36, %37, %cst_19 {dimension_numbers = #tpu.dot_dimension_numbers<[1], [0], [0], [1], [0, 0, 1, 1], [], []>} : vector<1x128xbf16>, vector<128x256xbf16>, vector<1x256xf32> -> vector<1x256xf32>
      %39 = vector.broadcast %0 : f32 to vector<1x256xf32>
      %40 = arith.mulf %38, %39 : vector<1x256xf32>
      %cst_20 = arith.constant dense<0xFF800000> : vector<1xf32>
      %41 = vector.multi_reduction <maximumf>, %40, %cst_20 [1] : vector<1x256xf32> to vector<1xf32>
      %42 = vector.shape_cast %41 : vector<1xf32> to vector<1x1xf32>
      %43 = vector.broadcast %42 : vector<1x1xf32> to vector<1x256xf32>
      %44 = arith.cmpf oeq, %40, %43 : vector<1x256xf32>
      %c256_i32 = arith.constant 256 : i32
      %45 = vector.broadcast %c256_i32 : i32 to vector<1x256xi32>
      %46 = arith.select %44, %2, %45 : vector<1x256xi1>, vector<1x256xi32>
      %47 = vector.shape_cast %46 : vector<1x256xi32> to vector<1x1x256xi32>
      %cst_21 = arith.constant dense<2147483647> : vector<1xi32>
      %48 = vector.multi_reduction <minsi>, %47, %cst_21 [1, 2] : vector<1x1x256xi32> to vector<1xi32>
      %49 = vector.shape_cast %48 : vector<1xi32> to vector<1x1x1xi32>
      %50 = vector.extract %49[0, 0, 0] : i32 from vector<1x1x1xi32>
      %c1_i32 = arith.constant 1 : i32
      %51 = arith.cmpi eq, %50, %c1_i32 : i32
      %52 = arith.extui %51 : i1 to i32
      %c0_i32_22 = arith.constant 0 : i32
      %53 = arith.cmpi ne, %52, %c0_i32_22 : i32
      scf.if %53 {
        %c1_i32_24 = arith.constant 1 : i32
        %c0_25 = arith.constant 0 : index
        %57 = memref.load %arg16[%c0_25] : memref<3xi32, #tpu.memory_space<smem>>
        memref.store %c1_i32_24, %arg16[%c0_25] : memref<3xi32, #tpu.memory_space<smem>>
      } else {
      }
      %true = arith.constant true
      %54 = arith.xori %51, %true : i1
      %55 = arith.extui %54 : i1 to i32
      %c0_i32_23 = arith.constant 0 : i32
      %56 = arith.cmpi ne, %55, %c0_i32_23 : i32
      scf.if %56 {
        %c0_24 = arith.constant 0 : index
        %c0_25 = arith.constant 0 : index
        %57 = vector.load %arg15[%c0_24, %c0_25] : memref<1x256xf32, #tpu.memory_space<vmem>>, vector<1x256xf32>
        %58 = arith.mulf %40, %57 : vector<1x256xf32>
        %cst_26 = arith.constant dense<0xFF800000> : vector<1xf32>
        %59 = vector.multi_reduction <maximumf>, %58, %cst_26 [1] : vector<1x256xf32> to vector<1xf32>
        %60 = vector.shape_cast %59 : vector<1xf32> to vector<1x1xf32>
        %61 = vector.broadcast %60 : vector<1x1xf32> to vector<1x256xf32>
        %62 = arith.cmpf oeq, %58, %61 : vector<1x256xf32>
        %c256_i32_27 = arith.constant 256 : i32
        %63 = vector.broadcast %c256_i32_27 : i32 to vector<1x256xi32>
        %64 = arith.select %62, %2, %63 : vector<1x256xi1>, vector<1x256xi32>
        %65 = vector.shape_cast %64 : vector<1x256xi32> to vector<1x1x256xi32>
        %cst_28 = arith.constant dense<2147483647> : vector<1xi32>
        %66 = vector.multi_reduction <minsi>, %65, %cst_28 [1, 2] : vector<1x1x256xi32> to vector<1xi32>
        %67 = vector.shape_cast %66 : vector<1xi32> to vector<1x1x1xi32>
        %68 = vector.extract %67[0, 0, 0] : i32 from vector<1x1x1xi32>
        %c1_29 = arith.constant 1 : index
        %69 = memref.load %arg16[%c1_29] : memref<3xi32, #tpu.memory_space<smem>>
        %70 = arith.index_cast %69 : i32 to index
        %c0_30 = arith.constant 0 : index
        %71 = vector.load %arg12[%70, %c0_30] : memref<4x256xf32, #tpu.memory_space<vmem>>, vector<1x256xf32>
        tpu.vector_store %arg12[%70, %c0_30], %58 {strides = array<i32>} : memref<4x256xf32, #tpu.memory_space<vmem>>, vector<1x256xf32>,
        %72 = arith.index_cast %69 : i32 to index
        %73 = memref.load %arg10[%72] : memref<4xi32, #tpu.memory_space<smem>>
        memref.store %68, %arg10[%72] : memref<4xi32, #tpu.memory_space<smem>>
        %c1_i32_31 = arith.constant 1 : i32
        %74 = arith.addi %69, %c1_i32_31 : i32
        %c1_32 = arith.constant 1 : index
        %75 = memref.load %arg16[%c1_32] : memref<3xi32, #tpu.memory_space<smem>>
        memref.store %74, %arg16[%c1_32] : memref<3xi32, #tpu.memory_space<smem>>
        %c2_33 = arith.constant 2 : index
        %76 = memref.load %arg16[%c2_33] : memref<3xi32, #tpu.memory_space<smem>>
        memref.store %68, %arg16[%c2_33] : memref<3xi32, #tpu.memory_space<smem>>
        %77 = vector.broadcast %68 : i32 to vector<1x256xi32>
        %78 = arith.cmpi eq, %2, %77 : vector<1x256xi32>
        %c0_34 = arith.constant 0 : index
        %c0_35 = arith.constant 0 : index
        %79 = vector.load %arg15[%c0_34, %c0_35] : memref<1x256xf32, #tpu.memory_space<vmem>>, vector<1x256xf32>
        %80 = vector.broadcast %1 : f32 to vector<1x256xf32>
        %81 = arith.select %78, %80, %79 : vector<1x256xi1>, vector<1x256xf32>
        %c0_36 = arith.constant 0 : index
        %c0_37 = arith.constant 0 : index
        %82 = vector.load %arg15[%c0_36, %c0_37] : memref<1x256xf32, #tpu.memory_space<vmem>>, vector<1x256xf32>
        tpu.vector_store %arg15[%c0_36, %c0_37], %81 {strides = array<i32>} : memref<1x256xf32, #tpu.memory_space<vmem>>, vector<1x256xf32>,
      } else {
      }
    } else {
    }
    %c3_i32 = arith.constant 3 : i32
    %12 = arith.cmpi eq, %arg0, %c3_i32 : i32
    %13 = arith.extui %12 : i1 to i32
    %c0_i32_5 = arith.constant 0 : i32
    %14 = arith.cmpi ne, %13, %c0_i32_5 : i32
    scf.if %14 {
      %c1_6 = arith.constant 1 : index
      %15 = memref.load %arg16[%c1_6] : memref<3xi32, #tpu.memory_space<smem>>
      %c0_7 = arith.constant 0 : index
      %16 = memref.load %arg11[%c0_7] : memref<1xi32, #tpu.memory_space<smem>>
      memref.store %15, %arg11[%c0_7] : memref<1xi32, #tpu.memory_space<smem>>
    } else {
    }
    return
  }
  func.func @transform_0(%arg0: i32) -> i32 {
    %c0_i32 = arith.constant 0 : i32
    %c0_i32_0 = arith.constant 0 : i32
    return %c0_i32 : i32
  }
  func.func @transform_1(%arg0: i32) -> i32 {
    %c0_i32 = arith.constant 0 : i32
    %c0_i32_0 = arith.constant 0 : i32
    return %c0_i32 : i32
  }
  func.func @transform_2(%arg0: i32) -> (i32, i32) {
    %c0_i32 = arith.constant 0 : i32
    %c0_i32_0 = arith.constant 0 : i32
    %c0_i32_1 = arith.constant 0 : i32
    return %c0_i32, %c0_i32_0 : i32, i32
  }
  func.func @transform_3(%arg0: i32) -> (i32, i32) {
    %c0_i32 = arith.constant 0 : i32
    %c0_i32_0 = arith.constant 0 : i32
    %c0_i32_1 = arith.constant 0 : i32
    return %c0_i32, %c0_i32_0 : i32, i32
  }
  func.func @transform_4(%arg0: i32) -> (i32, i32) {
    %c0_i32 = arith.constant 0 : i32
    %c0_i32_0 = arith.constant 0 : i32
    %c0_i32_1 = arith.constant 0 : i32
    return %c0_i32, %c0_i32_0 : i32, i32
  }
  func.func @transform_5(%arg0: i32) -> (i32, i32) {
    %c0_i32 = arith.constant 0 : i32
    %c0_i32_0 = arith.constant 0 : i32
    %c0_i32_1 = arith.constant 0 : i32
    return %c0_i32, %c0_i32_0 : i32, i32
  }
  func.func @transform_6(%arg0: i32) -> (i32, i32) {
    %c0_i32 = arith.constant 0 : i32
    %c0_i32_0 = arith.constant 0 : i32
    %c0_i32_1 = arith.constant 0 : i32
    return %c0_i32, %c0_i32_0 : i32, i32
  }
  func.func @transform_7(%arg0: i32) -> (i32, i32) {
    %c0_i32 = arith.constant 0 : i32
    %c0_i32_0 = arith.constant 0 : i32
    %c0_i32_1 = arith.constant 0 : i32
    return %c0_i32, %c0_i32_0 : i32, i32
  }
  func.func @transform_8(%arg0: i32) -> (i32, i32) {
    %c0_i32 = arith.constant 0 : i32
    %c0_i32_0 = arith.constant 0 : i32
    %c0_i32_1 = arith.constant 0 : i32
    return %c0_i32, %c0_i32_0 : i32, i32
  }
  func.func @transform_9(%arg0: i32) -> i32 {
    %c0_i32 = arith.constant 0 : i32
    %c0_i32_0 = arith.constant 0 : i32
    return %c0_i32 : i32
  }
  func.func @transform_10(%arg0: i32) -> i32 {
    %c0_i32 = arith.constant 0 : i32
    %c0_i32_0 = arith.constant 0 : i32
    return %c0_i32 : i32
  }
  func.func @transform_11(%arg0: i32) -> (i32, i32) {
    %c0_i32 = arith.constant 0 : i32
    %c0_i32_0 = arith.constant 0 : i32
    %c0_i32_1 = arith.constant 0 : i32
    return %c0_i32, %c0_i32_0 : i32, i32
  }
}

</mosaic_0001>

<bundles_post_ra>
// kernel: _generate.1
= control target key start
LH: loop header
LB: loop body
LE: loop exit
PB: predicated region body
PF: predicated region fallthrough
CT: control target
= control target key end

     0   :  { %17 = vsyncpa [#allocation9], 0  ;;  %s2432_s0 = inlined_call_operand.hbm [shape: s32[3], index: 0, kind: input, shape index: {}]   ;;  %s2433_s1 = inlined_call_operand.hbm [shape: f32[2], index: 1, kind: input, shape index: {}]   ;;  %s2434_s2 = inlined_call_operand.hbm [shape: f32[1,256], index: 2, kind: input, shape index: {}]   ;;  %s2435_s3 = inlined_call_operand.hbm [shape: bf16[8,128], index: 3, kind: input, shape index: {}]   ;;  %s2436_s4 = inlined_call_operand.hbm [shape: f32[256,128], index: 4, kind: input, shape index: {}]   ;;  %s2437_s5 = inlined_call_operand.hbm [shape: bf16[128,128], index: 5, kind: input, shape index: {}]   ;;  %s2438_s6 = inlined_call_operand.hbm [shape: bf16[128,128], index: 6, kind: input, shape index: {}]   ;;  %s2439_s7 = inlined_call_operand.hbm [shape: bf16[128,128], index: 7, kind: input, shape index: {}]   ;;  %s2440_s8 = inlined_call_operand.hbm [shape: bf16[128,256], index: 8, kind: input, shape index: {}]   ;;  %s2441_s9 = inlined_call_operand.hbm [shape: s32[4], index: 9, kind: output, shape index: {0}]   ;;  %s2442_s10 = inlined_call_operand.hbm [shape: s32[1], index: 10, kind: output, shape index: {1}]   ;;  %s2443_s11 = inlined_call_operand.hbm [shape: f32[4,256], index: 11, kind: output, shape index: {2}]  }
   0x1   :  { %18 = vsyncpa [#allocation12], 0 }
   0x2   :  { %19 = vsyncpa [#allocation7], 0 }
   0x3   :  { %20 = vsyncpa [#allocation15], 0 }
   0x4   :  { %21 = vsyncpa [#allocation18], 0 }
   0x5   :  { %22 = vsyncpa [#allocation21], 0 }
   0x6   :  { %23 = vsyncpa [#allocation10], 0 }
   0x7   :  { %24 = vsyncpa [#allocation25], 0 }
   0x8   :  { %25 = vsyncpa [#allocation8], 0  ;;  %s2194_s17 = smov 0  }
   0x9 LB: > { %s332_s20 = sshll.u32 %s2435_s3, 4  ;;  %s2203_s21 = sadd.s32 4294967295, %s2112_s17   ;;  %s2112_s17 = sphi %s2194_s17, %s31_s17   ;;  %s333_s20 = int_to_ptr.hbm [resolvable:$true] %s332_s20 }
   0xa   : > { %p1385_p0 = scmp.ge.s32.totalorder %s2112_s17, 1  ;;  %p288_p1 = scmp.lt.s32.totalorder %s2112_s17, 5 }
   0xb   : > { %p1386_p2 = scmp.ne.s32.totalorder %s2203_s21, 0  ;;  %p1717_p3 = scmp.eq.s32.totalorder %s2203_s21, 0 }
   0xc   : > { %p2209_p4 = pnand %p1385_p0, %p288_p1  ;;  %s2114_s23 = smov [#allocation14]  }
   0xd   : > { %s334_s24 = sshll.u32 %s2114_s23, 4  ;;  %s357_s27 = sshll.u32 %s2437_s5, 4  ;;  %s335_s24 = int_to_ptr.vmem [resolvable:$true] %s334_s24  ;;  %s358_s27 = int_to_ptr.hbm [resolvable:$true] %s357_s27 }
   0xe   : > { %p1689_p5 = pneg %p2209_p4  ;;  %s2115_s29 = smov [#allocation17]  }
   0xf   : > { %s359_s30 = sshll.u32 %s2115_s29, 4  ;;  %s385_s14 = sshll.u32 %s2439_s7, 4  ;;  %s360_s30 = int_to_ptr.vmem [resolvable:$true] %s359_s30  ;;  %s386_s14 = int_to_ptr.hbm [resolvable:$true] %s385_s14 }
  0x10   : > { %p2220_p6 = pnand %p1717_p3, %p1689_p5  ;;  %s2444_s15 = smov 64  }
  0x11   : > { %s2117_s16 = smov 4   ;;  %s2118_s18 = smov [#allocation20]  }
  0x12   : > { %1701 = dma.hbm_to_vmem [thread:$0]  (!%p2220_p6), %s333_s20, 64, %s335_s24, [#allocation15]  }
  0x13   : > { %1707 = dma.hbm_to_vmem [thread:$0]  (!%p2220_p6), %s358_s27, 1024, %s360_s30, [#allocation18], %s2444_s15, %s2444_s15, %s2117_s16  }
  0x14   : > { %s387_s19 = sshll.u32 %s2118_s18, 4  ;;  %s300_s26 = sshll.u32 %s2432_s0, 4  ;;  %s388_s19 = int_to_ptr.vmem [resolvable:$true] %s387_s19  ;;  %s301_s26 = int_to_ptr.hbm [resolvable:$true] %s300_s26 }
  0x15   : > { %1713 = dma.hbm_to_vmem [thread:$0]  (!%p2220_p6), %s386_s14, 1024, %s388_s19, [#allocation21], %s2444_s15, %s2444_s15, %s2117_s16  }
  0x16   : > { %s310_s29 = sshll.u32 %s2433_s1, 4  ;;  %s2119_s27 = smov [#allocation6]   ;;  %s311_s29 = int_to_ptr.hbm [resolvable:$true] %s310_s29 }
  0x17   : > { %1692 = dma.hbm_to_smem (!%p2220_p6), %s301_s26, 16, %s2119_s27, [#allocation9]  }
  0x18   : > { %s2120_s30 = smov [#allocation11]   ;;  %s320_s18 = sshll.u32 %s2434_s2, 4  ;;  %s321_s18 = int_to_ptr.hbm [resolvable:$true] %s320_s18 }
  0x19   : > { %1695 = dma.hbm_to_smem (!%p2220_p6), %s311_s29, 16, %s2120_s30, [#allocation12]  }
  0x1a   : > { %s2121_s23 = smov [#allocation13]   ;;  %s343_s20 = sshll.u32 %s2436_s4, 4  ;;  %s344_s20 = int_to_ptr.hbm [resolvable:$true] %s343_s20 }
  0x1b   : > { %s322_s25 = sshll.u32 %s2121_s23, 4  ;;  %s2122_s26 = smov [#allocation16]   ;;  %s323_s25 = int_to_ptr.vmem [resolvable:$true] %s322_s25 }
  0x1c   : > { %1698 = dma.hbm_to_vmem [thread:$0]  (!%p2220_p6), %s321_s18, 32, %s323_s25, [#allocation7]  }
  0x1d   : > { %s345_s24 = sshll.u32 %s2122_s26, 4  ;;  %s2123_s29 = smov 128   ;;  %s346_s24 = int_to_ptr.vmem [resolvable:$true] %s345_s24 }
  0x1e   : > { %s2124_s27 = smov 8   ;;  %s371_s13 = sshll.u32 %s2438_s6, 4  ;;  %s372_s13 = int_to_ptr.hbm [resolvable:$true] %s371_s13 }
  0x1f   : > { %1704 = dma.hbm_to_vmem [thread:$0]  (!%p2220_p6), %s344_s20, 4096, %s346_s24, [#allocation15], %s2123_s29, %s2123_s29, %s2124_s27  }
  0x20   : > { %s2125_s23 = smov [#allocation19]   ;;  %s399_s18 = sshll.u32 %s2440_s8, 4  ;;  %s400_s18 = int_to_ptr.hbm [resolvable:$true] %s399_s18 }
  0x21   : > { %s373_s14 = sshll.u32 %s2125_s23, 4  ;;  %s2447_s25 = smov 64   ;;  %s374_s14 = int_to_ptr.vmem [resolvable:$true] %s373_s14 }
  0x22   : > { %1710 = dma.hbm_to_vmem [thread:$0]  (!%p2220_p6), %s372_s13, 1024, %s374_s14, [#allocation18], %s2447_s25, %s2447_s25, %s2117_s16  }
  0x23   : > { %s2126_s26 = smov [#allocation22]   ;;  %417 = sbr.rel (%p2209_p4) target bundleno = 2229 (0x8b5), region = 56 }
  0x24   : > { %s401_s20 = sshll.u32 %s2126_s26, 4  ;;  %s402_s20 = int_to_ptr.vmem [resolvable:$true] %s401_s20 }
  0x25   : > { %1716 = dma.hbm_to_vmem [thread:$0]  (!%p2220_p6), %s400_s18, 2048, %s402_s20, [#allocation21], %s2123_s29, %s2123_s29, %s2124_s27  }
  0x28   : > { %2075 = dma.done.wait (%p1717_p3), [#allocation9], 16  }
  0x29   : > { %2077 = vsyncadd (%p1717_p3), [#allocation9], 4294967280 }
  0x2a   : > { %2079 = dma.done.wait (%p1717_p3), [#allocation12], 16  }
  0x2b   : > { %2081 = vsyncadd (%p1717_p3), [#allocation12], 4294967280 }
  0x2c   : > { %2083 = dma.done.wait (%p1717_p3), [#allocation7], 32  }
  0x2d   : > { %2085 = vsyncadd (%p1717_p3), [#allocation7], 4294967264 }
  0x2e   : > { %2087 = dma.done.wait (%p1717_p3), [#allocation15], 4160  }
  0x2f   : > { %2089 = vsyncadd (%p1717_p3), [#allocation15], 4294963136 }
  0x30   : > { %2091 = dma.done.wait (%p1717_p3), [#allocation18], 2048  }
  0x31   : > { %2093 = vsyncadd (%p1717_p3), [#allocation18], 4294965248 }
  0x32   : > { %2095 = dma.done.wait (%p1717_p3), [#allocation21], 3072  }
  0x33   : > { %2097 = vsyncadd (%p1717_p3), [#allocation21], 4294964224 }
  0x34   : > { %464 = sfence }
  0x35   : > { %s2298_s22 = sld [smem:[#allocation11]]  ;;  %v491_v0 = vlaneseq  ;;  %497 = sbr.rel (%p1386_p2) target bundleno = 521 (0x209), region = 96 }
  0x36   : > { %s2300_s28 = sld [smem:[#allocation11 + $0x1]]  ;;  %s2127_s29 = smov (!%p1386_p2), 0  }
  0x37   : > { %v2303_v1 = vand.u32 127, %v491_v0  ;;  %s655_s15 = sld [smem:[#allocation6]] (!%p1386_p2)  ;;  %s2128_s27 = smov (!%p1386_p2), 1  }
  0x38   : > { %s1471_s16 = sld [smem:[#allocation6 + $0x1]] (!%p1386_p2) }
  0x39   : > { %v2306_v2 = vadd.s32 128, %v2303_v1  ;;  %s1472_s24 = sld [smem:[#allocation6 + $0x2]] (!%p1386_p2) }
  0x3a   : > { %vm677_vm6 = vcmask 1040384   ;;  %vm2326_vm7 = vcmp.lt.s32.totalorder %v491_v0, 256  ;;  %v700_v16 = vld [vmem:[#allocation13] sm:$0x3]  ;;  %v1595_v40 = vld [vmem:[#allocation19 + $0x30] sm:$0xff]  ;;  %v1594_v42 = vld [vmem:[#allocation19 + $0x28] sm:$0xff] }
  0x3b   : > { %v701_v17 = vstv %s2298_s22  ;;  %v719_v26 = vrot.slane %v2306_v2, 7  ;;  %v1596_v38 = vld [vmem:[#allocation19 + $0x38] sm:$0xff]  ;;  %v1603_v41 = vld [vmem:[#allocation20 + $0x30] sm:$0xff]  ;;  %v1602_v43 = vld [vmem:[#allocation20 + $0x28] sm:$0xff]  ;;  %687 = sst [smem:[#allocation23]] %s2127_s29  ;;  %v2129_v59 = vmov 0.0  }
  0x3c   : > { %v2311_v3 = vstv %s2300_s28  ;;  %v702_v18 = vmul.f32 %v701_v17, %v700_v16  ;;  %v1604_v39 = vld [vmem:[#allocation20 + $0x38] sm:$0xff]  ;;  %563 = vmatpush.bf16.msra.mxu0 %v1596_v38  ;;  %v1593_v44 = vld [vmem:[#allocation19 + $0x20] sm:$0xff]  ;;  %v1591_v48 = vld [vmem:[#allocation19 + $0x10] sm:$0xff]  ;;  %689 = sst [smem:[#allocation23 + $0x1]] %s2127_s29  ;;  %685 = vst [vmem:[#allocation26] sm:$0xff] %v2129_v59 }
  0x3d   : > { %v656_v4 = vstv %s655_s15  ;;  %v720_v28 = vsel %vm677_vm6, %v2303_v1, %v719_v26  ;;  %641 = vmatpush.bf16.msra.mxu1 %v1604_v39  ;;  %v1601_v45 = vld [vmem:[#allocation20 + $0x20] sm:$0xff]  ;;  %v1592_v46 = vld [vmem:[#allocation19 + $0x18] sm:$0xff]  ;;  %v1599_v49 = vld [vmem:[#allocation20 + $0x10] sm:$0xff]  ;;  %691 = sst [smem:[#allocation23 + $0x2]] %s2127_s29 }
  0x3e   : > { %vm657_vm0 = vcmp.eq.s32.totalorder %v2303_v1, %v656_v4  ;;  %vm658_vm1 = vcmp.eq.s32.totalorder %v2306_v2, %v656_v4  ;;  %v663_v5 = vstv %s1471_s16  ;;  %v1600_v47 = vld [vmem:[#allocation20 + $0x18] sm:$0xff]  ;;  %v1590_v50 = vld [vmem:[#allocation19 + $0x8] sm:$0xff]  ;;  %v1589_v53 = vld [vmem:[#allocation19] sm:$0xff]  ;;  %693 = sst [smem:[#allocation23 + $0x3]] %s2127_s29 }
  0x3f   : > { %v660_v6 = vsel %vm657_vm0, %v2311_v3, 1.0  ;;  %v661_v7 = vsel %vm658_vm1, %v2311_v3, 1.0  ;;  %vm664_vm2 = vcmp.eq.s32.totalorder %v2303_v1, %v663_v5  ;;  %vm665_vm3 = vcmp.eq.s32.totalorder %v2306_v2, %v663_v5  ;;  %v1598_v51 = vld [vmem:[#allocation20 + $0x8] sm:$0xff]  ;;  %v1597_v54 = vld [vmem:[#allocation20] sm:$0xff]  ;;  %v498_v57 = vld [vmem:[#allocation14] sm:$0xf] }
  0x40   : > { %v666_v8 = vsel %vm664_vm2, %v2311_v3, %v660_v6  ;;  %v667_v9 = vsel %vm665_vm3, %v2311_v3, %v661_v7  ;;  %v669_v10 = vstv %s1472_s24  ;;  %564 = vmatpush.bf16.msra.mxu0 %v1595_v40  ;;  %695 = sst [smem:[#allocation5]] %s2127_s29 }
  0x41   : > { %vm670_vm4 = vcmp.eq.s32.totalorder %v2303_v1, %v669_v10  ;;  %vm671_vm5 = vcmp.eq.s32.totalorder %v2306_v2, %v669_v10  ;;  %642 = vmatpush.bf16.msra.mxu1 %v1603_v41  ;;  %765 = sst [smem:[#allocation5 + $0x1]] %s2128_s27 }
  0x42   : > { %v672_v11 = vsel %vm670_vm4, %v2311_v3, %v666_v8  ;;  %v673_v12 = vsel %vm671_vm5, %v2311_v3, %v667_v9 }
  0x43   : > { %v676_v13 = vrot.slane %v673_v12, 7 }
  0x44   : > { %565 = vmatpush.bf16.msra.mxu0 %v1594_v42 }
  0x45   : > { %v678_v15 = vsel %vm677_vm6, %v672_v11, %v676_v13  ;;  %643 = vmatpush.bf16.msra.mxu1 %v1602_v43 }
  0x46   : > { %684 = vst.msk [vmem:[#allocation4] sm:$0x3] %vm2326_vm7, %v678_v15 }
  0x48   : > { %566 = vmatpush.bf16.msra.mxu0 %v1593_v44 }
  0x49   : > { %644 = vmatpush.bf16.msra.mxu1 %v1601_v45 }
  0x4c   : > { %567 = vmatpush.bf16.msra.mxu0 %v1592_v46 }
  0x4d   : > { %v703_v19 = vld [vmem:[#allocation4] sm:$0x3]  ;;  %645 = vmatpush.bf16.msra.mxu1 %v1600_v47 }
  0x4e   : > { %v2334_v20 = vmul.f32 %v703_v19, %v702_v18  ;;  %v770_v16 = vld [vmem:[#allocation4] sm:$0x3] }
  0x4f   : > { %v773_v17 = vperm.slane %v770_v16, 1  ;;  %v772_v19 = vperm.slane %v770_v16, 0 }
  0x50   : > { %v706_v21 = vperm.slane %v2334_v20, 0  ;;  %v707_v22 = vperm.slane %v2334_v20, 1  ;;  %568 = vmatpush.bf16.msra.mxu0 %v1591_v48  ;;  %761 = vst.msk [vmem:[#allocation26] ss:$4 sm:$0x3] %vm2326_vm7, %v2334_v20 }
  0x51   : > { %646 = vmatpush.bf16.msra.mxu1 %v1599_v49 }
  0x52   : > { %v710_v23 = vsel %vm677_vm6, %v706_v21, -inf  ;;  %v711_v24 = vsel %vm677_vm6, %v707_v22, -inf }
  0x53   : > { %v712_v25 = vmax.f32 %v710_v23, %v711_v24 }
  0x54   : > { %569 = vmatpush.bf16.msra.mxu0 %v1590_v50 }
  0x55   : > { %713 = vmax.xlane.f32.xlu0 %v712_v25  ;;  %647 = vmatpush.bf16.msra.mxu1 %v1598_v51 }
  0x58   : > { %570 = vmatpush.bf16.msra.mxu0 %v1589_v53 }
  0x59   : > { %648 = vmatpush.bf16.msra.mxu1 %v1597_v54 }
  0x5b   : > { %571 = vmatmul.bf16.vlgmr.msra.gmra.mxu0 %v498_v57 }
  0x5c   : > { %649 = vmatmul.bf16.vlgmr.msra.gmra.mxu1 %v498_v57 }
  0xc8   : > { %v714_v27 = vpop.xlane.xlu0 %713 }
  0xc9   : > { %v716_v29 = vperm.slane %v714_v27, 0 }
  0xcb   : > { %vm718_vm8 = vcmp.eq.f32.partialorder %v2334_v20, %v716_v29 }
  0xcc   : > { %v721_v30 = vsel %vm718_vm8, %v720_v28, 256 }
  0xcd   : > { %v722_v31 = vperm.slane %v721_v30, 0  ;;  %v723_v32 = vperm.slane %v721_v30, 1 }
  0xcf   : > { %v724_v33 = vsel %vm677_vm6, %v722_v31, 2147483647  ;;  %v725_v34 = vsel %vm677_vm6, %v723_v32, 2147483647 }
  0xd0   : > { %vm726_vm9 = vcmp.lt.s32.totalorder %v724_v33, %v725_v34 }
  0xd1   : > { %v727_v35 = vsel %vm726_vm9, %v724_v33, %v725_v34 }
  0xd2   : > { %v729_v36 = vshra.s32 %v727_v35, 16  ;;  %v728_v52 = vand.u32 65535, %v727_v35 }
  0xd4   : > { %v731_v37 = vcvt.s32.f32 %v729_v36  ;;  %v730_v56 = vcvt.s32.f32 %v728_v52 }
  0xd6   : > { %732 = vmin.xlane.f32.xlu0 %v731_v37 }
  0xd8   : > { %v572_v8 = vpop.f32.mrf.mxu0 }
  0xd9   : > { %v650_v9 = vpop.f32.mrf.mxu1  ;;  %576 = vst [vmem:[#allocation2] sm:$0xff] %v572_v8 }
  0xda   : > { %654 = vst [vmem:[#allocation3] sm:$0xff] %v650_v9 }
  0xe0   : > { %v574_v13 = vpop.f32.mrf.mxu0 }
  0xe1   : > { %v652_v15 = vpop.f32.mrf.mxu1 }
 0x149   : > { %v733_v55 = vpop.xlane.xlu0 %732 }
 0x14a   : > { %vm734_vm10 = vcmp.eq.f32.partialorder %v731_v37, %v733_v55  ;;  %v739_v60 = vcvt.f32.s32 %v733_v55 }
 0x14b   : > { %v735_v58 = vsel %vm734_vm10, %v730_v56, inf }
 0x14c   : > { %736 = vmin.xlane.f32.xlu1 %v735_v58  ;;  %v740_v62 = vshll.u32 %v739_v60, 16 }
 0x1bf   : > { %v737_v61 = vpop.xlane.xlu1 %736 }
 0x1c0   : > { %v738_v63 = vcvt.f32.s32 %v737_v61 }
 0x1c2   : > { %v741_v4 = vadd.s32 %v740_v62, %v738_v63 }
 0x1c4   : > { %v742_v5 = vrot.slane %v741_v4, 4 }
 0x1c6   : > { %vm743_vm11 = vcmp.lt.s32.totalorder %v741_v4, %v742_v5 }
 0x1c7   : > { %v744_v6 = vsel %vm743_vm11, %v741_v4, %v742_v5 }
 0x1c8   : > { %v745_v7 = vrot.slane %v744_v6, 2 }
 0x1ca   : > { %vm746_vm12 = vcmp.lt.s32.totalorder %v744_v6, %v745_v7 }
 0x1cb   : > { %v747_v10 = vsel %vm746_vm12, %v744_v6, %v745_v7 }
 0x1cc   : > { %v748_v11 = vrot.slane %v747_v10, 1 }
 0x1ce   : > { %vm749_vm13 = vcmp.lt.s32.totalorder %v747_v10, %v748_v11 }
 0x1cf   : > { %v750_v12 = vsel %vm749_vm13, %v747_v10, %v748_v11 }
 0x1d0   : > { %1631 = vpush %v750_v12 }
 0x201   : > { %s1632_s30 = spop %1631 }
 0x202   : > { %763 = sst [smem:[#allocation23]] %s1632_s30  ;;  %v767_v18 = vstv %s1632_s30 }
 0x203   : > { %766 = sst [smem:[#allocation5 + $0x2]] %s1632_s30  ;;  %vm768_vm14 = vcmp.eq.s32.totalorder %v2303_v1, %v767_v18  ;;  %vm769_vm15 = vcmp.eq.s32.totalorder %v2306_v2, %v767_v18 }
 0x204   : > { %v777_v20 = vsel %vm769_vm15, %v2311_v3, %v773_v17  ;;  %v776_v22 = vsel %vm768_vm14, %v2311_v3, %v772_v19 }
 0x205   : > { %v780_v21 = vrot.slane %v777_v20, 7 }
 0x207   : > { %v781_v23 = vsel %vm677_vm6, %v776_v22, %v780_v21 }
 0x208   : > { %783 = vst.msk [vmem:[#allocation4] sm:$0x3] %vm2326_vm7, %v781_v23 }
 0x209 PF: > { %s785_s12 = sld [smem:[#allocation5]]  ;;  %p784_p7 = scmp.gt.s32.totalorder %s2203_s21, 0 }
 0x20f   : > { %p786_p8 = scmp.eq.s32.totalorder %s785_s12, 0 }
 0x211   : > { %p787_p9 = pnand %p786_p8, %p784_p7 }
 0x212   : > { %s1476_s13 = sld [smem:[#allocation5 + $0x2]] (!%p787_p9)  ;;  %s2130_s19 = smov (!%p787_p9), 1  }
 0x213   : > { %790 = sbr.rel (%p787_p9) target bundleno = 2213 (0x8a5), region = 100 }
 0x218   : > { %v1613_v24 = vld [vmem:[#allocation17 + $0x38] sm:$0xff]  ;;  %v1612_v25 = vld [vmem:[#allocation17 + $0x30] sm:$0xff]  ;;  %v872_v26 = vld [vmem:[#allocation2] sm:$0xff]  ;;  %s792_s23 = scalar_lea.vmem [#allocation16], %s1476_s13  ;;  %vm893_vm0 = vcmask 57344   ;;  %vm906_vm1 = vcmask 64512  }
 0x219   : > { %859 = vmatpush.bf16.msra.mxu0 %v1613_v24  ;;  %888 = vmatpush.xpose.msra.mxu1 %v872_v26  ;;  %v1611_v27 = vld [vmem:[#allocation17 + $0x28] sm:$0xff]  ;;  %v1610_v3 = vld [vmem:[#allocation17 + $0x20] sm:$0xff]  ;;  %v1609_v28 = vld [vmem:[#allocation17 + $0x18] sm:$0xff]  ;;  %vm1057_vm2 = vcmask 1040384  }
 0x21a   : > { %v1608_v14 = vld [vmem:[#allocation17 + $0x10] sm:$0xff]  ;;  %v1607_v29 = vld [vmem:[#allocation17 + $0x8] sm:$0xff]  ;;  %v1606_v30 = vld [vmem:[#allocation17] sm:$0xff] }
 0x21b   : > { %v2357_v31 = vld [vmem:[%s792_s23] sm:$0x1]  ;;  %v905_v42 = vld [vmem:[#allocation3] sm:$0xff]  ;;  %v1629_v44 = vld [vmem:[#allocation22 + $0x74] sm:$0xf0] }
 0x21c   : > { %v794_v32 = vpack.c.bf16 %v2357_v31, %v2357_v31  ;;  %v1568_v43 = vld [vmem:[#allocation22 + $0x70] sm:$0xf]  ;;  %v1628_v45 = vld [vmem:[#allocation22 + $0x74] sm:$0xf]  ;;  %v1570_v47 = vld [vmem:[#allocation22 + $0x78] sm:$0xf0] }
 0x21d   : > { %860 = vmatpush.bf16.msra.mxu0 %v1612_v25  ;;  %925 = vmatpush.msrb.mxu1 %v905_v42  ;;  %v1569_v46 = vor.u32 %v1629_v44, %v1568_v43  ;;  %v1560_v48 = vld [vmem:[#allocation22 + $0x60] sm:$0xf]  ;;  %v1627_v49 = vld [vmem:[#allocation22 + $0x64] sm:$0xf0]  ;;  %v1573_v50 = vor.u32 %v1628_v45, %v1570_v47  ;;  %v1626_v51 = vld [vmem:[#allocation22 + $0x64] sm:$0xf] }
 0x21e   : > { %v1562_v52 = vld [vmem:[#allocation22 + $0x68] sm:$0xf0]  ;;  %v1561_v53 = vor.u32 %v1627_v49, %v1560_v48  ;;  %v1552_v55 = vld [vmem:[#allocation22 + $0x50] sm:$0xf]  ;;  %v1625_v56 = vld [vmem:[#allocation22 + $0x54] sm:$0xf0] }
 0x21f   : > { %1028 = vmatpush.bf16.msra.mxu3 %v1569_v46  ;;  %1041 = vmatpush.bf16.msra.mxu2 %v1573_v50  ;;  %v1565_v54 = vor.u32 %v1626_v51, %v1562_v52  ;;  %v1624_v57 = vld [vmem:[#allocation22 + $0x54] sm:$0xf]  ;;  %v1554_v58 = vld [vmem:[#allocation22 + $0x58] sm:$0xf0]  ;;  %v1553_v59 = vor.u32 %v1625_v56, %v1552_v55  ;;  %v1544_v61 = vld [vmem:[#allocation22 + $0x40] sm:$0xf] }
 0x220   : > { %v1557_v60 = vor.u32 %v1624_v57, %v1554_v58  ;;  %v1623_v62 = vld [vmem:[#allocation22 + $0x44] sm:$0xf0]  ;;  %v1622_v63 = vld [vmem:[#allocation22 + $0x44] sm:$0xf]  ;;  %v1546_v4 = vld [vmem:[#allocation22 + $0x48] sm:$0xf0] }
 0x221   : > { %861 = vmatpush.bf16.msra.mxu0 %v1611_v27  ;;  %v1545_v5 = vor.u32 %v1623_v62, %v1544_v61  ;;  %v1549_v6 = vor.u32 %v1622_v63, %v1546_v4  ;;  %v1536_v7 = vld [vmem:[#allocation22 + $0x30] sm:$0xf]  ;;  %v1621_v8 = vld [vmem:[#allocation22 + $0x34] sm:$0xf0]  ;;  %v1620_v9 = vld [vmem:[#allocation22 + $0x34] sm:$0xf] }
 0x222   : > { %v1538_v10 = vld [vmem:[#allocation22 + $0x38] sm:$0xf0]  ;;  %v1537_v11 = vor.u32 %v1621_v8, %v1536_v7  ;;  %v1528_v13 = vld [vmem:[#allocation22 + $0x20] sm:$0xf]  ;;  %v1619_v15 = vld [vmem:[#allocation22 + $0x24] sm:$0xf0] }
 0x223   : > { %1029 = vmatpush.bf16.msra.mxu3 %v1561_v53  ;;  %1042 = vmatpush.bf16.msra.mxu2 %v1565_v54  ;;  %v1541_v12 = vor.u32 %v1620_v9, %v1538_v10  ;;  %v1618_v16 = vld [vmem:[#allocation22 + $0x24] sm:$0xf]  ;;  %v1530_v17 = vld [vmem:[#allocation22 + $0x28] sm:$0xf0]  ;;  %v1529_v18 = vor.u32 %v1619_v15, %v1528_v13  ;;  %v1520_v20 = vld [vmem:[#allocation22 + $0x10] sm:$0xf] }
 0x224   : > { %v1533_v19 = vor.u32 %v1618_v16, %v1530_v17  ;;  %v1617_v21 = vld [vmem:[#allocation22 + $0x14] sm:$0xf0]  ;;  %v1616_v22 = vld [vmem:[#allocation22 + $0x14] sm:$0xf]  ;;  %v1522_v23 = vld [vmem:[#allocation22 + $0x18] sm:$0xf0] }
 0x225   : > { %862 = vmatpush.bf16.msra.mxu0 %v1610_v3  ;;  %v1521_v25 = vor.u32 %v1617_v21, %v1520_v20  ;;  %v1525_v26 = vor.u32 %v1616_v22, %v1522_v23 }
 0x227   : > { %1030 = vmatpush.bf16.msra.mxu3 %v1553_v59  ;;  %1043 = vmatpush.bf16.msra.mxu2 %v1557_v60 }
 0x229   : > { %863 = vmatpush.bf16.msra.mxu0 %v1609_v28  ;;  %v1512_v28 = vld [vmem:[#allocation22] sm:$0xf] }
 0x22b   : > { %1031 = vmatpush.bf16.msra.mxu3 %v1545_v5  ;;  %1044 = vmatpush.bf16.msra.mxu2 %v1549_v6 }
 0x22d   : > { %864 = vmatpush.bf16.msra.mxu0 %v1608_v14  ;;  %v1615_v14 = vld [vmem:[#allocation22 + $0x4] sm:$0xf0] }
 0x22f   : > { %1032 = vmatpush.bf16.msra.mxu3 %v1537_v11  ;;  %1045 = vmatpush.bf16.msra.mxu2 %v1541_v12 }
 0x231   : > { %865 = vmatpush.bf16.msra.mxu0 %v1607_v29  ;;  %v1614_v29 = vld [vmem:[#allocation22 + $0x4] sm:$0xf] }
 0x233   : > { %1033 = vmatpush.bf16.msra.mxu3 %v1529_v18  ;;  %1046 = vmatpush.bf16.msra.mxu2 %v1533_v19 }
 0x235   : > { %866 = vmatpush.bf16.msra.mxu0 %v1606_v30  ;;  %v1513_v30 = vor.u32 %v1615_v14, %v1512_v28 }
 0x237   : > { %1034 = vmatpush.bf16.msra.mxu3 %v1521_v25  ;;  %1047 = vmatpush.bf16.msra.mxu2 %v1525_v26 }
 0x238   : > { %867 = vmatmul.bf16.vlgmr.msra.gmra.mxu0 %v794_v32  ;;  %v1514_v32 = vld [vmem:[#allocation22 + $0x8] sm:$0xf0] }
 0x23b   : > { %1035 = vmatpush.bf16.msra.mxu3 %v1513_v30 }
 0x2b5   : > { %v868_v33 = vpop.f32.mrf.mxu0 }
 0x2b6   : > { %889 = vmatmul.f32.vlgmr.msra.gmra.mxu1 %v868_v33  ;;  %v1517_v33 = vor.u32 %v1614_v29, %v1514_v32 }
 0x2b8   : > { %1048 = vmatpush.bf16.msra.mxu2 %v1517_v33 }
 0x2bd   : > { %v870_v34 = vpop.f32.mrf.mxu0 }
 0x333   : > { %v890_v35 = vpop.f32.mrf.mxu1 }
 0x334   : > { %v894_v36 = vsel %vm893_vm0, %v890_v35, -inf }
 0x335   : > { %895 = vmax.xlane.f32.xlu0 %v894_v36 }
 0x3a8   : > { %v896_v37 = vpop.xlane.xlu0 %895 }
 0x3a9   : > { %v897_v38 = vsub.f32 %v890_v35, %v896_v37  ;;  %v1054_v37 = vstv %s2298_s22 }
 0x3ab   : > { %v898_v39 = vmul.f32 1.442695, %v897_v38 }
 0x3ad   : > { %1770 = vpow2.f32 %v898_v39 }
 0x3b3   : > { %v2361_v40 = vpop.eup %1770 }
 0x3b4   : > { %v900_v41 = vsel %vm893_vm0, %v2361_v40, 0.0 }
 0x3b5   : > { %901 = vadd.xlane.f32.xlu0 %v900_v41 }
 0x428   : > { %v902_v24 = vpop.xlane.xlu0 %901 }
 0x429   : > { %1772 = vrcp.f32 %v902_v24 }
 0x42f   : > { %v1773_v27 = vpop.eup %1772 }
 0x430   : > { %v904_v3 = vmul.f32 %v1773_v27, %v2361_v40 }
 0x432   : > { %1509 = vmatmul.msk.f32.vlgmr.msrb.gmra.mxu1 %vm906_vm1, %v904_v3 }
 0x4af   : > { %v927_v34 = vpop.f32.mrf.mxu1 }
 0x4b0   : > { %v930_v35 = vadd.f32 %v927_v34, %v2357_v31 }
 0x4b2   : > { %v931_v36 = vpack.c.bf16 %v930_v35, %v930_v35 }
 0x4b4   : > { %1036 = vmatmul.bf16.vlgmr.msra.gmra.mxu3 %v931_v36  ;;  %1049 = vmatmul.bf16.vlgmr.msra.gmra.mxu2 %v931_v36 }
 0x537   : > { %v1037_v38 = vpop.f32.mrf.mxu3  ;;  %v1050_v39 = vpop.f32.mrf.mxu2 }
 0x538   : > { %v1055_v40 = vmul.f32 %v1054_v37, %v1037_v38  ;;  %v1056_v41 = vmul.f32 %v1054_v37, %v1050_v39 }
 0x53a   : > { %v1058_v42 = vsel %vm1057_vm2, %v1055_v40, -inf  ;;  %v1059_v43 = vsel %vm1057_vm2, %v1056_v41, -inf }
 0x53b   : > { %v1060_v44 = vmax.f32 %v1058_v42, %v1059_v43 }
 0x53d   : > { %1061 = vmax.xlane.f32.xlu1 %v1060_v44 }
 0x53f   : > { %v1039_v45 = vpop.f32.mrf.mxu3  ;;  %v1052_v46 = vpop.f32.mrf.mxu2 }
 0x5b0   : > { %v1062_v47 = vpop.xlane.xlu1 %1061 }
 0x5b1   : > { %vm1063_vm3 = vcmp.eq.f32.partialorder %v1055_v40, %v1062_v47  ;;  %vm1064_vm4 = vcmp.eq.f32.partialorder %v1056_v41, %v1062_v47 }
 0x5b2   : > { %v1065_v31 = vsel %vm1063_vm3, %v2303_v1, 256  ;;  %v1066_v48 = vsel %vm1064_vm4, %v2306_v2, 256 }
 0x5b3   : > { %v1067_v49 = vsel %vm1057_vm2, %v1065_v31, 2147483647  ;;  %v1068_v50 = vsel %vm1057_vm2, %v1066_v48, 2147483647 }
 0x5b4   : > { %vm1069_vm5 = vcmp.lt.s32.totalorder %v1067_v49, %v1068_v50 }
 0x5b5   : > { %v1070_v51 = vsel %vm1069_vm5, %v1067_v49, %v1068_v50 }
 0x5b6   : > { %v1072_v52 = vshra.s32 %v1070_v51, 16  ;;  %v1071_v54 = vand.u32 65535, %v1070_v51 }
 0x5b8   : > { %v1074_v53 = vcvt.s32.f32 %v1072_v52  ;;  %v1073_v56 = vcvt.s32.f32 %v1071_v54 }
 0x5ba   : > { %1075 = vmin.xlane.f32.xlu1 %v1074_v53 }
 0x62d   : > { %v1076_v55 = vpop.xlane.xlu1 %1075 }
 0x62e   : > { %vm1077_vm6 = vcmp.eq.f32.partialorder %v1074_v53, %v1076_v55  ;;  %v1082_v58 = vcvt.f32.s32 %v1076_v55 }
 0x62f   : > { %v1078_v57 = vsel %vm1077_vm6, %v1073_v56, inf }
 0x630   : > { %1079 = vmin.xlane.f32.xlu2 %v1078_v57  ;;  %v1083_v60 = vshll.u32 %v1082_v58, 16 }
 0x6a3   : > { %v1080_v59 = vpop.xlane.xlu2 %1079 }
 0x6a4   : > { %v1081_v61 = vcvt.f32.s32 %v1080_v59 }
 0x6a6   : > { %v1084_v62 = vadd.s32 %v1083_v60, %v1081_v61 }
 0x6a8   : > { %v1085_v63 = vrot.slane %v1084_v62, 4 }
 0x6aa   : > { %vm1086_vm7 = vcmp.lt.s32.totalorder %v1084_v62, %v1085_v63 }
 0x6ab   : > { %v1087_v4 = vsel %vm1086_vm7, %v1084_v62, %v1085_v63 }
 0x6ac   : > { %v1088_v5 = vrot.slane %v1087_v4, 2 }
 0x6ae   : > { %vm1089_vm8 = vcmp.lt.s32.totalorder %v1087_v4, %v1088_v5 }
 0x6af   : > { %v1090_v6 = vsel %vm1089_vm8, %v1087_v4, %v1088_v5 }
 0x6b0   : > { %v1091_v7 = vrot.slane %v1090_v6, 1 }
 0x6b2   : > { %vm1092_vm9 = vcmp.lt.s32.totalorder %v1090_v6, %v1091_v7 }
 0x6b3   : > { %v1093_v8 = vsel %vm1092_vm9, %v1090_v6, %v1091_v7 }
 0x6b4   : > { %1633 = vpush %v1093_v8 }
 0x6e5   : > { %s1634_s14 = spop %1633 }
 0x6e6   : > { %p1735_p10 = scmp.eq.s32.totalorder %s1634_s14, 1 }
 0x6e7   : > { %s2373_s18 = sld [smem:[#allocation5 + $0x1]] (!%p1735_p10) }
 0x6e8   : > { %1674 = sst [smem:[#allocation5]] (%p1735_p10), %s2130_s19  ;;  %1104 = sbr.rel (%p1735_p10) target bundleno = 2213 (0x8a5), region = 108 }
 0x6ed   : > { %v1105_v9 = vld [vmem:[#allocation4] sm:$0x3]  ;;  %s1160_s25 = sshra.s32 %s2373_s18, 2  ;;  %s1163_s26 = sand.u32 3, %s2373_s18  ;;  %vm2381_vm10 = vcmp.lt.s32.totalorder %v491_v0, 256  ;;  %v1180_v44 = vstv %s2300_s28 }
 0x6ee   : > { %v1107_v10 = vperm.slane %v1105_v9, 0  ;;  %v1108_v11 = vperm.slane %v1105_v9, 1  ;;  %s1630_s20 = sshll.u32 %s1160_s25, 3  ;;  %s1171_s22 = sadd.s32 1, %s2373_s18  ;;  %v1179_v42 = vld [vmem:[#allocation4] sm:$0x3] }
 0x6ef   : > { %s1166_s15 = sadd.s32 %s1630_s20, %s1163_s26  ;;  %1173 = sst [smem:[#allocation5 + $0x1]] %s1171_s22  ;;  %v1183_v43 = vperm.slane %v1179_v42, 1  ;;  %v1182_v46 = vperm.slane %v1179_v42, 0 }
 0x6f0   : > { %v1111_v12 = vmul.f32 %v1107_v10, %v1055_v40  ;;  %v1112_v13 = vmul.f32 %v1108_v11, %v1056_v41  ;;  %s1167_s16 = scalar_lea.vmem [#allocation26], %s1166_s15  ;;  %s1169_s29 = scalar_lea.smem [#allocation23], %s2373_s18 }
 0x6f2   : > { %v1113_v15 = vsel %vm1057_vm2, %v1111_v12, -inf  ;;  %v1114_v16 = vsel %vm1057_vm2, %v1112_v13, -inf  ;;  %v1153_v17 = vrot.slane %v1112_v13, 7 }
 0x6f3   : > { %v1115_v18 = vmax.f32 %v1113_v15, %v1114_v16 }
 0x6f4   : > { %v1154_v19 = vsel %vm1057_vm2, %v1111_v12, %v1153_v17 }
 0x6f5   : > { %1116 = vmax.xlane.f32.xlu0 %v1115_v18  ;;  %1168 = vst.msk [vmem:[%s1167_s16] ss:$4 sm:$0x3] %vm2381_vm10, %v1154_v19 }
 0x768   : > { %v1117_v21 = vpop.xlane.xlu0 %1116 }
 0x769   : > { %vm1118_vm11 = vcmp.eq.f32.partialorder %v1111_v12, %v1117_v21  ;;  %vm1119_vm12 = vcmp.eq.f32.partialorder %v1112_v13, %v1117_v21 }
 0x76a   : > { %v1120_v22 = vsel %vm1118_vm11, %v2303_v1, 256  ;;  %v1121_v23 = vsel %vm1119_vm12, %v2306_v2, 256 }
 0x76b   : > { %v1122_v0 = vsel %vm1057_vm2, %v1120_v22, 2147483647  ;;  %v1123_v24 = vsel %vm1057_vm2, %v1121_v23, 2147483647 }
 0x76c   : > { %vm1124_vm13 = vcmp.lt.s32.totalorder %v1122_v0, %v1123_v24 }
 0x76d   : > { %v1125_v25 = vsel %vm1124_vm13, %v1122_v0, %v1123_v24 }
 0x76e   : > { %v1127_v26 = vshra.s32 %v1125_v25, 16  ;;  %v1126_v3 = vand.u32 65535, %v1125_v25 }
 0x770   : > { %v1129_v27 = vcvt.s32.f32 %v1127_v26  ;;  %v1128_v14 = vcvt.s32.f32 %v1126_v3 }
 0x772   : > { %1130 = vmin.xlane.f32.xlu0 %v1129_v27 }
 0x7e5   : > { %v1131_v28 = vpop.xlane.xlu0 %1130 }
 0x7e6   : > { %vm1132_vm14 = vcmp.eq.f32.partialorder %v1129_v27, %v1131_v28  ;;  %v1137_v30 = vcvt.f32.s32 %v1131_v28 }
 0x7e7   : > { %v1133_v29 = vsel %vm1132_vm14, %v1128_v14, inf }
 0x7e8   : > { %1134 = vmin.xlane.f32.xlu1 %v1133_v29  ;;  %v1138_v33 = vshll.u32 %v1137_v30, 16 }
 0x85b   : > { %v1135_v32 = vpop.xlane.xlu1 %1134 }
 0x85c   : > { %v1136_v34 = vcvt.f32.s32 %v1135_v32 }
 0x85e   : > { %v1139_v35 = vadd.s32 %v1138_v33, %v1136_v34 }
 0x860   : > { %v1140_v36 = vrot.slane %v1139_v35, 4 }
 0x862   : > { %vm1141_vm15 = vcmp.lt.s32.totalorder %v1139_v35, %v1140_v36 }
 0x863   : > { %v1142_v37 = vsel %vm1141_vm15, %v1139_v35, %v1140_v36 }
 0x864   : > { %v1143_v38 = vrot.slane %v1142_v37, 2 }
 0x866   : > { %vm1144_vm0 = vcmp.lt.s32.totalorder %v1142_v37, %v1143_v38 }
 0x867   : > { %v1145_v39 = vsel %vm1144_vm0, %v1142_v37, %v1143_v38 }
 0x868   : > { %v1146_v40 = vrot.slane %v1145_v39, 1 }
 0x86a   : > { %vm1147_vm1 = vcmp.lt.s32.totalorder %v1145_v39, %v1146_v40 }
 0x86b   : > { %v1148_v41 = vsel %vm1147_vm1, %v1145_v39, %v1146_v40 }
 0x86c   : > { %1635 = vpush %v1148_v41 }
 0x89d   : > { %s1636_s24 = spop %1635 }
 0x89e   : > { %1170 = sst [smem:[%s1169_s29]] %s1636_s24  ;;  %v1176_v45 = vstv %s1636_s24 }
 0x89f   : > { %1175 = sst [smem:[#allocation5 + $0x2]] %s1636_s24  ;;  %vm1177_vm3 = vcmp.eq.s32.totalorder %v2303_v1, %v1176_v45  ;;  %vm1178_vm4 = vcmp.eq.s32.totalorder %v2306_v2, %v1176_v45 }
 0x8a0   : > { %v1187_v47 = vsel %vm1178_vm4, %v1180_v44, %v1183_v43  ;;  %v1186_v48 = vsel %vm1177_vm3, %v1180_v44, %v1182_v46 }
 0x8a1   : > { %v1190_v31 = vrot.slane %v1187_v47, 7 }
 0x8a3   : > { %v1191_v49 = vsel %vm1057_vm2, %v1186_v48, %v1190_v31 }
 0x8a4   : > { %1193 = vst.msk [vmem:[#allocation4] sm:$0x3] %vm2381_vm10, %v1191_v49 }
 0x8a5 PF: > { %p1736_p11 = scmp.eq.s32.totalorder %s2203_s21, 3  ;;  %s1207_s30 = sshll.u32 %s2441_s9, 4  ;;  %s1208_s30 = int_to_ptr.hbm [resolvable:$true] %s1207_s30 }
 0x8a6   : > { %s1580_s12 = sld [smem:[#allocation5 + $0x1]]  ;;  %s2131_s13 = smov [#allocation23]  }
 0x8a7   : > { %1678 = dma.smem_to_hbm (%p1736_p11), %s2131_s13, 16, %s1208_s30, [#allocation10]  }
 0x8a8   : > { %s1217_s19 = sshll.u32 %s2442_s10, 4  ;;  %s2132_s18 = smov [#allocation26]   ;;  %s1218_s19 = int_to_ptr.hbm [resolvable:$true] %s1217_s19 }
 0x8a9   : > { %s1227_s25 = sshll.u32 %s2132_s18, 4  ;;  %s1229_s22 = sshll.u32 %s2443_s11, 4  ;;  %s1228_s25 = int_to_ptr.vmem [resolvable:$true] %s1227_s25  ;;  %s1230_s22 = int_to_ptr.hbm [resolvable:$true] %s1229_s22 }
 0x8aa   : > { %s2133_s15 = smov [#allocation24]  }
 0x8ab   : > { %1682 = dma.vmem_to_hbm [thread:$0]  (%p1736_p11), %s1228_s25, 128, %s1230_s22, [#allocation8]  }
 0x8ac   : > { %1676 = sst [smem:[#allocation24]] (%p1736_p11), %s1580_s12 }
 0x8ad   : > { %1680 = dma.smem_to_hbm (%p1736_p11), %s2133_s15, 16, %s1218_s19, [#allocation25]  }
 0x8ae   : > { %2099 = dma.done.wait (%p1736_p11), [#allocation10], 16  }
 0x8af   : > { %2101 = vsyncadd (%p1736_p11), [#allocation10], 4294967280 }
 0x8b0   : > { %2103 = dma.done.wait (%p1736_p11), [#allocation25], 16  }
 0x8b1   : > { %2105 = vsyncadd (%p1736_p11), [#allocation25], 4294967280 }
 0x8b2   : > { %2107 = dma.done.wait (%p1736_p11), [#allocation8], 128  }
 0x8b3   : > { %2109 = vsyncadd (%p1736_p11), [#allocation8], 4294967168 }
 0x8b4   : > { %1248 = sfence }
 0x8b5 PF: > { %s31_s17 = sadd.s32 1, %s2112_s17  }
 0x8b6   : > { %p28_p12 = scmp.ge.s32.totalorder %s31_s17, 6  }
 0x8b8   :  { %30 = sbr.rel (!%p28_p12) target bundleno = 9 (0x9), region = 171 }
 0x8bd   :  { %1254 = vsyncpa [#allocation7], 1 }
 0x8be   :  { %1256 = vsyncpa [#allocation7 + $0x1], 1 }
 0x8bf   :  { %1257 = vsyncpa [#allocation15], 1 }
 0x8c0   :  { %1258 = vsyncpa [#allocation18], 1 }
 0x8c1   :  { %1259 = vsyncpa [#allocation21], 1 }
 0x8c2   :  { %1260 = vsyncpa [#allocation8], 1 }
 0x8c3   :  { %1262 = vsyncpa [#allocation8 + $0x1], 1 }
 0x8c4   :  { %1263 = vsyncpa [#allocation9], 1 }
 0x8c5   :  { %1265 = vsyncpa [#allocation9 + $0x1], 1 }
 0x8c6   :  { %1266 = vsyncpa [#allocation12], 1 }
 0x8c7   :  { %1267 = vsyncpa [#allocation10], 1 }
 0x8c8   :  { %1269 = vsyncpa [#allocation10 + $0x1], 1 }
 0x8c9   :  { %1270 = vsyncpa [#allocation25], 1 }

</bundles_post_ra>
